<compile_context>
chip_gen: v6e
topology: v6e:2x2x1
jax: 0.10.0
libtpu: 0.0.40
codegen_flags: <defaults>
</compile_context>

<pallas_src>
import functools
import math

import jax
import jax.numpy as jnp
from jax import lax
from jax.experimental import pallas as pl
from jax.experimental.pallas import tpu as pltpu

BLOCK_SIZE = 8
NUM_EMBEDDING_DIMENSIONS = 32


def _mha_kernel(x_ref, w_ref, o_ref, *, B, T, H, Dh):
    # x_ref : (B*T, C)        flattened batch*time
    # w_ref : (C, 3*H*Dh)     [queries(all heads) | keys | values], query part pre-scaled
    # o_ref : (B*T, H*Dh)     final layout (heads concatenated along last dim)
    HD = H * Dh

    x = x_ref[...]                                            # (B*T, C)
    w = w_ref[...]                                            # (C, 3*HD)

    # Single fused projection: one MXU pass for q, k, v of every head.
    qkv = jnp.dot(x, w, preferred_element_type=jnp.float32)   # (B*T, 3*HD)
    q = qkv[:, 0 * HD:1 * HD]                                 # (B*T, HD)  (already scaled)
    k = qkv[:, 1 * HD:2 * HD]
    v = qkv[:, 2 * HD:3 * HD]

    # Causal mask, shared by every (batch, head) pair.
    row = lax.broadcasted_iota(jnp.int32, (T, T), 0)
    col = lax.broadcasted_iota(jnp.int32, (T, T), 1)
    causal = col <= row
    neg = jnp.float32(-1e30)   # large finite negative: exp underflows to 0, no NaN risk

    # B*H = 8 tiny attention problems -> short fully-unrolled loop.
    batch_outs = []
    for b in range(B):
        rows = slice(b * T, (b + 1) * T)
        head_outs = []
        for h in range(H):
            cols = slice(h * Dh, (h + 1) * Dh)
            qb = q[rows, cols]                                # (T, Dh)
            kb = k[rows, cols]                                # (T, Dh)
            vb = v[rows, cols]                                # (T, Dh)

            # scores = qb @ kb^T without an explicit transpose:
            # contract the Dh axis (axis 1) of both operands.
            s = lax.dot_general(
                qb, kb, (((1,), (1,)), ((), ())),
                preferred_element_type=jnp.float32)           # (T, T)
            s = jnp.where(causal, s, neg)

            # numerically stable softmax (matches F.softmax)
            m = jnp.max(s, axis=-1, keepdims=True)
            p = jnp.exp(s - m)
            denom = jnp.sum(p, axis=-1, keepdims=True)
            # approx=False keeps exact semantics (approx=True would need a looser
            # tolerance vs. the reference; this kernel is latency-bound anyway).
            att = p * pl.reciprocal(denom, approx=False)

            head_outs.append(
                jnp.dot(att, vb, preferred_element_type=jnp.float32))  # (T, Dh)

        batch_outs.append(jnp.concatenate(head_outs, axis=1))  # (T, HD)

    # One full-ref store in the final layout (no masked per-head HBM stores,
    # no host-side transpose needed afterwards).
    o_ref[...] = jnp.concatenate(batch_outs, axis=0)           # (B*T, HD)


def multi_head_attention(x, wq, wk, wv):
    """x: (B, T, C); wq/wk/wv: (H, C, Dh). Returns (B, T, H*Dh)."""
    B, T, C = x.shape
    H, _, Dh = wq.shape
    HD = H * Dh

    # Fold the num_channels**-0.5 score scaling into the query weights (one-time, host side).
    wq_scaled = wq * jnp.float32(C ** -0.5)

    # Fuse all projections into a single (C, 3*H*Dh) weight.
    def stack(wh):  # (H, C, Dh) -> (C, H*Dh), head-major along the last dim
        return jnp.transpose(wh, (1, 0, 2)).reshape(C, HD)

    w_fused = jnp.concatenate([stack(wq_scaled), stack(wk), stack(wv)], axis=1)  # (C, 3*HD)

    x2 = x.reshape(B * T, C)   # contiguous reshape, free in XLA

    kernel = functools.partial(_mha_kernel, B=B, T=T, H=H, Dh=Dh)
    out2 = pl.pallas_call(
        kernel,
        out_shape=jax.ShapeDtypeStruct((B * T, HD), jnp.float32),
        grid=(1,),   # single invocation: whole problem (~6 KB) lives in VMEM at once
        in_specs=[
            pl.BlockSpec((B * T, C), lambda i: (0, 0)),
            pl.BlockSpec((C, 3 * HD), lambda i: (0, 0)),
        ],
        out_specs=pl.BlockSpec((B * T, HD), lambda i: (0, 0)),
        compiler_params=pltpu.CompilerParams(dimension_semantics=("arbitrary",)),
    )(x2, w_fused)

    return out2.reshape(B, T, HD)   # contiguous reshape, free


def _reference(x, wq, wk, wv):
    """Pure-JAX reference mirroring the PyTorch forward (scale by C**-0.5, causal mask)."""
    B, T, C = x.shape
    H, _, Dh = wq.shape
    mask = jnp.tril(jnp.ones((T, T)))
    outs = []
    for h in range(H):
        q = x @ wq[h]
        k = x @ wk[h]
        v = x @ wv[h]
        s = (q @ jnp.swapaxes(k, -2, -1)) * (C ** -0.5)
        s = jnp.where(mask == 0, -jnp.inf, s)
        w = jax.nn.softmax(s, axis=-1)
        outs.append(w @ v)
    return jnp.concatenate(outs, axis=-1)


if __name__ == "__main__":
    B = 2
    T = BLOCK_SIZE                    # 8
    C = NUM_EMBEDDING_DIMENSIONS      # 32
    num_heads = 4
    head_size = 8

    key = jax.random.PRNGKey(0)
    kx, kq, kk, kv = jax.random.split(key, 4)

    x = jax.random.normal(kx, (B, T, C), dtype=jnp.float32)

    # nn.Linear(C, head_size, bias=False) weight is (head_size, C),
    # init ~ U(-1/sqrt(C), 1/sqrt(C)); stored transposed as (C, head_size), stacked over heads.
    bound = 1.0 / math.sqrt(C)
    wq = jax.random.uniform(kq, (num_heads, C, head_size), jnp.float32, -bound, bound)
    wk = jax.random.uniform(kk, (num_heads, C, head_size), jnp.float32, -bound, bound)
    wv = jax.random.uniform(kv, (num_heads, C, head_size), jnp.float32, -bound, bound)

    out = multi_head_attention(x, wq, wk, wv)
    out = jax.block_until_ready(out)

    ref = _reference(x, wq, wk, wv)
    assert out.shape == (B, T, num_heads * head_size)
    assert jnp.allclose(out, ref, atol=1e-5, rtol=1e-5)

    print("KERNEL_OK")
</pallas_src>

<mosaic_0001>
module attributes {stable_mosaic.version = 11 : i64} {
  func.func @_mha_kernel(%arg0: i32, %arg1: memref<16x32xf32, #tpu.memory_space<vmem>>, %arg2: memref<32x96xf32, #tpu.memory_space<vmem>>, %arg3: memref<16x32xf32, #tpu.memory_space<vmem>>) attributes {dimension_semantics = [#tpu.dimension_semantics<arbitrary>], iteration_bounds = array<i64: 1>, scalar_prefetch = 0 : i64, scratch_operands = 0 : i64, tpu.core_type = #tpu.core_type<tc>, window_params = [{pipeline_mode = #tpu.pipeline_mode<synchronous>, transform_indices = @transform_0, window_bounds = array<i64: 16, 32>}, {pipeline_mode = #tpu.pipeline_mode<synchronous>, transform_indices = @transform_1, window_bounds = array<i64: 32, 96>}, {pipeline_mode = #tpu.pipeline_mode<synchronous>, transform_indices = @transform_2, window_bounds = array<i64: 16, 32>}]} {
    %c0 = arith.constant 0 : index
    %c0_0 = arith.constant 0 : index
    %0 = vector.load %arg1[%c0, %c0_0] : memref<16x32xf32, #tpu.memory_space<vmem>>, vector<16x32xf32>
    %c0_1 = arith.constant 0 : index
    %c0_2 = arith.constant 0 : index
    %1 = vector.load %arg2[%c0_1, %c0_2] : memref<32x96xf32, #tpu.memory_space<vmem>>, vector<32x96xf32>
    %cst = arith.constant dense<0.000000e+00> : vector<16x96xf32>
    %2 = tpu.matmul %0, %1, %cst {dimension_numbers = #tpu.dot_dimension_numbers<[1], [0], [0], [1], [0, 0, 1, 1], [], []>} : vector<16x32xf32>, vector<32x96xf32>, vector<16x96xf32> -> vector<16x96xf32>
    %3 = vector.extract_strided_slice %2 {offsets = [0, 0], sizes = [16, 32], strides = [1, 1]} : vector<16x96xf32> to vector<16x32xf32>
    %4 = vector.extract_strided_slice %2 {offsets = [0, 32], sizes = [16, 32], strides = [1, 1]} : vector<16x96xf32> to vector<16x32xf32>
    %5 = vector.extract_strided_slice %2 {offsets = [0, 64], sizes = [16, 32], strides = [1, 1]} : vector<16x96xf32> to vector<16x32xf32>
    %6 = tpu.iota {dimensions = array<i32: 0>} : vector<8x8xi32>
    %7 = tpu.iota {dimensions = array<i32: 1>} : vector<8x8xi32>
    %8 = arith.cmpi sle, %7, %6 : vector<8x8xi32>
    %9 = vector.extract_strided_slice %3 {offsets = [0, 0], sizes = [8, 8], strides = [1, 1]} : vector<16x32xf32> to vector<8x8xf32>
    %10 = vector.extract_strided_slice %4 {offsets = [0, 0], sizes = [8, 8], strides = [1, 1]} : vector<16x32xf32> to vector<8x8xf32>
    %11 = vector.extract_strided_slice %5 {offsets = [0, 0], sizes = [8, 8], strides = [1, 1]} : vector<16x32xf32> to vector<8x8xf32>
    %cst_3 = arith.constant dense<0.000000e+00> : vector<8x8xf32>
    %12 = tpu.matmul %9, %10, %cst_3 {dimension_numbers = #tpu.dot_dimension_numbers<[1], [1], [0], [0], [0, 0, 1, 0], [], []>} : vector<8x8xf32>, vector<8x8xf32>, vector<8x8xf32> -> vector<8x8xf32>
    %cst_4 = arith.constant -1.000000e+30 : f32
    %13 = vector.broadcast %cst_4 : f32 to vector<8x8xf32>
    %14 = arith.select %8, %12, %13 : vector<8x8xi1>, vector<8x8xf32>
    %cst_5 = arith.constant dense<0xFF800000> : vector<8xf32>
    %15 = vector.multi_reduction <maximumf>, %14, %cst_5 [1] : vector<8x8xf32> to vector<8xf32>
    %16 = vector.shape_cast %15 : vector<8xf32> to vector<8x1xf32>
    %17 = vector.broadcast %16 : vector<8x1xf32> to vector<8x8xf32>
    %18 = arith.subf %14, %17 : vector<8x8xf32>
    %19 = math.exp %18 : vector<8x8xf32>
    %cst_6 = arith.constant dense<0.000000e+00> : vector<8xf32>
    %20 = vector.multi_reduction <add>, %19, %cst_6 [1] : vector<8x8xf32> to vector<8xf32>
    %21 = vector.shape_cast %20 : vector<8xf32> to vector<8x1xf32>
    %22 = tpu.reciprocal %21 : vector<8x1xf32> -> vector<8x1xf32>
    %23 = vector.broadcast %22 : vector<8x1xf32> to vector<8x8xf32>
    %24 = arith.mulf %19, %23 : vector<8x8xf32>
    %cst_7 = arith.constant dense<0.000000e+00> : vector<8x8xf32>
    %25 = tpu.matmul %24, %11, %cst_7 {dimension_numbers = #tpu.dot_dimension_numbers<[1], [0], [0], [1], [0, 0, 1, 1], [], []>} : vector<8x8xf32>, vector<8x8xf32>, vector<8x8xf32> -> vector<8x8xf32>
    %26 = vector.extract_strided_slice %3 {offsets = [0, 8], sizes = [8, 8], strides = [1, 1]} : vector<16x32xf32> to vector<8x8xf32>
    %27 = vector.extract_strided_slice %4 {offsets = [0, 8], sizes = [8, 8], strides = [1, 1]} : vector<16x32xf32> to vector<8x8xf32>
    %28 = vector.extract_strided_slice %5 {offsets = [0, 8], sizes = [8, 8], strides = [1, 1]} : vector<16x32xf32> to vector<8x8xf32>
    %cst_8 = arith.constant dense<0.000000e+00> : vector<8x8xf32>
    %29 = tpu.matmul %26, %27, %cst_8 {dimension_numbers = #tpu.dot_dimension_numbers<[1], [1], [0], [0], [0, 0, 1, 0], [], []>} : vector<8x8xf32>, vector<8x8xf32>, vector<8x8xf32> -> vector<8x8xf32>
    %cst_9 = arith.constant -1.000000e+30 : f32
    %30 = vector.broadcast %cst_9 : f32 to vector<8x8xf32>
    %31 = arith.select %8, %29, %30 : vector<8x8xi1>, vector<8x8xf32>
    %cst_10 = arith.constant dense<0xFF800000> : vector<8xf32>
    %32 = vector.multi_reduction <maximumf>, %31, %cst_10 [1] : vector<8x8xf32> to vector<8xf32>
    %33 = vector.shape_cast %32 : vector<8xf32> to vector<8x1xf32>
    %34 = vector.broadcast %33 : vector<8x1xf32> to vector<8x8xf32>
    %35 = arith.subf %31, %34 : vector<8x8xf32>
    %36 = math.exp %35 : vector<8x8xf32>
    %cst_11 = arith.constant dense<0.000000e+00> : vector<8xf32>
    %37 = vector.multi_reduction <add>, %36, %cst_11 [1] : vector<8x8xf32> to vector<8xf32>
    %38 = vector.shape_cast %37 : vector<8xf32> to vector<8x1xf32>
    %39 = tpu.reciprocal %38 : vector<8x1xf32> -> vector<8x1xf32>
    %40 = vector.broadcast %39 : vector<8x1xf32> to vector<8x8xf32>
    %41 = arith.mulf %36, %40 : vector<8x8xf32>
    %cst_12 = arith.constant dense<0.000000e+00> : vector<8x8xf32>
    %42 = tpu.matmul %41, %28, %cst_12 {dimension_numbers = #tpu.dot_dimension_numbers<[1], [0], [0], [1], [0, 0, 1, 1], [], []>} : vector<8x8xf32>, vector<8x8xf32>, vector<8x8xf32> -> vector<8x8xf32>
    %43 = vector.extract_strided_slice %3 {offsets = [0, 16], sizes = [8, 8], strides = [1, 1]} : vector<16x32xf32> to vector<8x8xf32>
    %44 = vector.extract_strided_slice %4 {offsets = [0, 16], sizes = [8, 8], strides = [1, 1]} : vector<16x32xf32> to vector<8x8xf32>
    %45 = vector.extract_strided_slice %5 {offsets = [0, 16], sizes = [8, 8], strides = [1, 1]} : vector<16x32xf32> to vector<8x8xf32>
    %cst_13 = arith.constant dense<0.000000e+00> : vector<8x8xf32>
    %46 = tpu.matmul %43, %44, %cst_13 {dimension_numbers = #tpu.dot_dimension_numbers<[1], [1], [0], [0], [0, 0, 1, 0], [], []>} : vector<8x8xf32>, vector<8x8xf32>, vector<8x8xf32> -> vector<8x8xf32>
    %cst_14 = arith.constant -1.000000e+30 : f32
    %47 = vector.broadcast %cst_14 : f32 to vector<8x8xf32>
    %48 = arith.select %8, %46, %47 : vector<8x8xi1>, vector<8x8xf32>
    %cst_15 = arith.constant dense<0xFF800000> : vector<8xf32>
    %49 = vector.multi_reduction <maximumf>, %48, %cst_15 [1] : vector<8x8xf32> to vector<8xf32>
    %50 = vector.shape_cast %49 : vector<8xf32> to vector<8x1xf32>
    %51 = vector.broadcast %50 : vector<8x1xf32> to vector<8x8xf32>
    %52 = arith.subf %48, %51 : vector<8x8xf32>
    %53 = math.exp %52 : vector<8x8xf32>
    %cst_16 = arith.constant dense<0.000000e+00> : vector<8xf32>
    %54 = vector.multi_reduction <add>, %53, %cst_16 [1] : vector<8x8xf32> to vector<8xf32>
    %55 = vector.shape_cast %54 : vector<8xf32> to vector<8x1xf32>
    %56 = tpu.reciprocal %55 : vector<8x1xf32> -> vector<8x1xf32>
    %57 = vector.broadcast %56 : vector<8x1xf32> to vector<8x8xf32>
    %58 = arith.mulf %53, %57 : vector<8x8xf32>
    %cst_17 = arith.constant dense<0.000000e+00> : vector<8x8xf32>
    %59 = tpu.matmul %58, %45, %cst_17 {dimension_numbers = #tpu.dot_dimension_numbers<[1], [0], [0], [1], [0, 0, 1, 1], [], []>} : vector<8x8xf32>, vector<8x8xf32>, vector<8x8xf32> -> vector<8x8xf32>
    %60 = vector.extract_strided_slice %3 {offsets = [0, 24], sizes = [8, 8], strides = [1, 1]} : vector<16x32xf32> to vector<8x8xf32>
    %61 = vector.extract_strided_slice %4 {offsets = [0, 24], sizes = [8, 8], strides = [1, 1]} : vector<16x32xf32> to vector<8x8xf32>
    %62 = vector.extract_strided_slice %5 {offsets = [0, 24], sizes = [8, 8], strides = [1, 1]} : vector<16x32xf32> to vector<8x8xf32>
    %cst_18 = arith.constant dense<0.000000e+00> : vector<8x8xf32>
    %63 = tpu.matmul %60, %61, %cst_18 {dimension_numbers = #tpu.dot_dimension_numbers<[1], [1], [0], [0], [0, 0, 1, 0], [], []>} : vector<8x8xf32>, vector<8x8xf32>, vector<8x8xf32> -> vector<8x8xf32>
    %cst_19 = arith.constant -1.000000e+30 : f32
    %64 = vector.broadcast %cst_19 : f32 to vector<8x8xf32>
    %65 = arith.select %8, %63, %64 : vector<8x8xi1>, vector<8x8xf32>
    %cst_20 = arith.constant dense<0xFF800000> : vector<8xf32>
    %66 = vector.multi_reduction <maximumf>, %65, %cst_20 [1] : vector<8x8xf32> to vector<8xf32>
    %67 = vector.shape_cast %66 : vector<8xf32> to vector<8x1xf32>
    %68 = vector.broadcast %67 : vector<8x1xf32> to vector<8x8xf32>
    %69 = arith.subf %65, %68 : vector<8x8xf32>
    %70 = math.exp %69 : vector<8x8xf32>
    %cst_21 = arith.constant dense<0.000000e+00> : vector<8xf32>
    %71 = vector.multi_reduction <add>, %70, %cst_21 [1] : vector<8x8xf32> to vector<8xf32>
    %72 = vector.shape_cast %71 : vector<8xf32> to vector<8x1xf32>
    %73 = tpu.reciprocal %72 : vector<8x1xf32> -> vector<8x1xf32>
    %74 = vector.broadcast %73 : vector<8x1xf32> to vector<8x8xf32>
    %75 = arith.mulf %70, %74 : vector<8x8xf32>
    %cst_22 = arith.constant dense<0.000000e+00> : vector<8x8xf32>
    %76 = tpu.matmul %75, %62, %cst_22 {dimension_numbers = #tpu.dot_dimension_numbers<[1], [0], [0], [1], [0, 0, 1, 1], [], []>} : vector<8x8xf32>, vector<8x8xf32>, vector<8x8xf32> -> vector<8x8xf32>
    %77 = tpu.concatenate %25, %42, %59, %76 in 1 : vector<8x8xf32>, vector<8x8xf32>, vector<8x8xf32>, vector<8x8xf32> -> vector<8x32xf32>
    %78 = vector.extract_strided_slice %3 {offsets = [8, 0], sizes = [8, 8], strides = [1, 1]} : vector<16x32xf32> to vector<8x8xf32>
    %79 = vector.extract_strided_slice %4 {offsets = [8, 0], sizes = [8, 8], strides = [1, 1]} : vector<16x32xf32> to vector<8x8xf32>
    %80 = vector.extract_strided_slice %5 {offsets = [8, 0], sizes = [8, 8], strides = [1, 1]} : vector<16x32xf32> to vector<8x8xf32>
    %cst_23 = arith.constant dense<0.000000e+00> : vector<8x8xf32>
    %81 = tpu.matmul %78, %79, %cst_23 {dimension_numbers = #tpu.dot_dimension_numbers<[1], [1], [0], [0], [0, 0, 1, 0], [], []>} : vector<8x8xf32>, vector<8x8xf32>, vector<8x8xf32> -> vector<8x8xf32>
    %cst_24 = arith.constant -1.000000e+30 : f32
    %82 = vector.broadcast %cst_24 : f32 to vector<8x8xf32>
    %83 = arith.select %8, %81, %82 : vector<8x8xi1>, vector<8x8xf32>
    %cst_25 = arith.constant dense<0xFF800000> : vector<8xf32>
    %84 = vector.multi_reduction <maximumf>, %83, %cst_25 [1] : vector<8x8xf32> to vector<8xf32>
    %85 = vector.shape_cast %84 : vector<8xf32> to vector<8x1xf32>
    %86 = vector.broadcast %85 : vector<8x1xf32> to vector<8x8xf32>
    %87 = arith.subf %83, %86 : vector<8x8xf32>
    %88 = math.exp %87 : vector<8x8xf32>
    %cst_26 = arith.constant dense<0.000000e+00> : vector<8xf32>
    %89 = vector.multi_reduction <add>, %88, %cst_26 [1] : vector<8x8xf32> to vector<8xf32>
    %90 = vector.shape_cast %89 : vector<8xf32> to vector<8x1xf32>
    %91 = tpu.reciprocal %90 : vector<8x1xf32> -> vector<8x1xf32>
    %92 = vector.broadcast %91 : vector<8x1xf32> to vector<8x8xf32>
    %93 = arith.mulf %88, %92 : vector<8x8xf32>
    %cst_27 = arith.constant dense<0.000000e+00> : vector<8x8xf32>
    %94 = tpu.matmul %93, %80, %cst_27 {dimension_numbers = #tpu.dot_dimension_numbers<[1], [0], [0], [1], [0, 0, 1, 1], [], []>} : vector<8x8xf32>, vector<8x8xf32>, vector<8x8xf32> -> vector<8x8xf32>
    %95 = vector.extract_strided_slice %3 {offsets = [8, 8], sizes = [8, 8], strides = [1, 1]} : vector<16x32xf32> to vector<8x8xf32>
    %96 = vector.extract_strided_slice %4 {offsets = [8, 8], sizes = [8, 8], strides = [1, 1]} : vector<16x32xf32> to vector<8x8xf32>
    %97 = vector.extract_strided_slice %5 {offsets = [8, 8], sizes = [8, 8], strides = [1, 1]} : vector<16x32xf32> to vector<8x8xf32>
    %cst_28 = arith.constant dense<0.000000e+00> : vector<8x8xf32>
    %98 = tpu.matmul %95, %96, %cst_28 {dimension_numbers = #tpu.dot_dimension_numbers<[1], [1], [0], [0], [0, 0, 1, 0], [], []>} : vector<8x8xf32>, vector<8x8xf32>, vector<8x8xf32> -> vector<8x8xf32>
    %cst_29 = arith.constant -1.000000e+30 : f32
    %99 = vector.broadcast %cst_29 : f32 to vector<8x8xf32>
    %100 = arith.select %8, %98, %99 : vector<8x8xi1>, vector<8x8xf32>
    %cst_30 = arith.constant dense<0xFF800000> : vector<8xf32>
    %101 = vector.multi_reduction <maximumf>, %100, %cst_30 [1] : vector<8x8xf32> to vector<8xf32>
    %102 = vector.shape_cast %101 : vector<8xf32> to vector<8x1xf32>
    %103 = vector.broadcast %102 : vector<8x1xf32> to vector<8x8xf32>
    %104 = arith.subf %100, %103 : vector<8x8xf32>
    %105 = math.exp %104 : vector<8x8xf32>
    %cst_31 = arith.constant dense<0.000000e+00> : vector<8xf32>
    %106 = vector.multi_reduction <add>, %105, %cst_31 [1] : vector<8x8xf32> to vector<8xf32>
    %107 = vector.shape_cast %106 : vector<8xf32> to vector<8x1xf32>
    %108 = tpu.reciprocal %107 : vector<8x1xf32> -> vector<8x1xf32>
    %109 = vector.broadcast %108 : vector<8x1xf32> to vector<8x8xf32>
    %110 = arith.mulf %105, %109 : vector<8x8xf32>
    %cst_32 = arith.constant dense<0.000000e+00> : vector<8x8xf32>
    %111 = tpu.matmul %110, %97, %cst_32 {dimension_numbers = #tpu.dot_dimension_numbers<[1], [0], [0], [1], [0, 0, 1, 1], [], []>} : vector<8x8xf32>, vector<8x8xf32>, vector<8x8xf32> -> vector<8x8xf32>
    %112 = vector.extract_strided_slice %3 {offsets = [8, 16], sizes = [8, 8], strides = [1, 1]} : vector<16x32xf32> to vector<8x8xf32>
    %113 = vector.extract_strided_slice %4 {offsets = [8, 16], sizes = [8, 8], strides = [1, 1]} : vector<16x32xf32> to vector<8x8xf32>
    %114 = vector.extract_strided_slice %5 {offsets = [8, 16], sizes = [8, 8], strides = [1, 1]} : vector<16x32xf32> to vector<8x8xf32>
    %cst_33 = arith.constant dense<0.000000e+00> : vector<8x8xf32>
    %115 = tpu.matmul %112, %113, %cst_33 {dimension_numbers = #tpu.dot_dimension_numbers<[1], [1], [0], [0], [0, 0, 1, 0], [], []>} : vector<8x8xf32>, vector<8x8xf32>, vector<8x8xf32> -> vector<8x8xf32>
    %cst_34 = arith.constant -1.000000e+30 : f32
    %116 = vector.broadcast %cst_34 : f32 to vector<8x8xf32>
    %117 = arith.select %8, %115, %116 : vector<8x8xi1>, vector<8x8xf32>
    %cst_35 = arith.constant dense<0xFF800000> : vector<8xf32>
    %118 = vector.multi_reduction <maximumf>, %117, %cst_35 [1] : vector<8x8xf32> to vector<8xf32>
    %119 = vector.shape_cast %118 : vector<8xf32> to vector<8x1xf32>
    %120 = vector.broadcast %119 : vector<8x1xf32> to vector<8x8xf32>
    %121 = arith.subf %117, %120 : vector<8x8xf32>
    %122 = math.exp %121 : vector<8x8xf32>
    %cst_36 = arith.constant dense<0.000000e+00> : vector<8xf32>
    %123 = vector.multi_reduction <add>, %122, %cst_36 [1] : vector<8x8xf32> to vector<8xf32>
    %124 = vector.shape_cast %123 : vector<8xf32> to vector<8x1xf32>
    %125 = tpu.reciprocal %124 : vector<8x1xf32> -> vector<8x1xf32>
    %126 = vector.broadcast %125 : vector<8x1xf32> to vector<8x8xf32>
    %127 = arith.mulf %122, %126 : vector<8x8xf32>
    %cst_37 = arith.constant dense<0.000000e+00> : vector<8x8xf32>
    %128 = tpu.matmul %127, %114, %cst_37 {dimension_numbers = #tpu.dot_dimension_numbers<[1], [0], [0], [1], [0, 0, 1, 1], [], []>} : vector<8x8xf32>, vector<8x8xf32>, vector<8x8xf32> -> vector<8x8xf32>
    %129 = vector.extract_strided_slice %3 {offsets = [8, 24], sizes = [8, 8], strides = [1, 1]} : vector<16x32xf32> to vector<8x8xf32>
    %130 = vector.extract_strided_slice %4 {offsets = [8, 24], sizes = [8, 8], strides = [1, 1]} : vector<16x32xf32> to vector<8x8xf32>
    %131 = vector.extract_strided_slice %5 {offsets = [8, 24], sizes = [8, 8], strides = [1, 1]} : vector<16x32xf32> to vector<8x8xf32>
    %cst_38 = arith.constant dense<0.000000e+00> : vector<8x8xf32>
    %132 = tpu.matmul %129, %130, %cst_38 {dimension_numbers = #tpu.dot_dimension_numbers<[1], [1], [0], [0], [0, 0, 1, 0], [], []>} : vector<8x8xf32>, vector<8x8xf32>, vector<8x8xf32> -> vector<8x8xf32>
    %cst_39 = arith.constant -1.000000e+30 : f32
    %133 = vector.broadcast %cst_39 : f32 to vector<8x8xf32>
    %134 = arith.select %8, %132, %133 : vector<8x8xi1>, vector<8x8xf32>
    %cst_40 = arith.constant dense<0xFF800000> : vector<8xf32>
    %135 = vector.multi_reduction <maximumf>, %134, %cst_40 [1] : vector<8x8xf32> to vector<8xf32>
    %136 = vector.shape_cast %135 : vector<8xf32> to vector<8x1xf32>
    %137 = vector.broadcast %136 : vector<8x1xf32> to vector<8x8xf32>
    %138 = arith.subf %134, %137 : vector<8x8xf32>
    %139 = math.exp %138 : vector<8x8xf32>
    %cst_41 = arith.constant dense<0.000000e+00> : vector<8xf32>
    %140 = vector.multi_reduction <add>, %139, %cst_41 [1] : vector<8x8xf32> to vector<8xf32>
    %141 = vector.shape_cast %140 : vector<8xf32> to vector<8x1xf32>
    %142 = tpu.reciprocal %141 : vector<8x1xf32> -> vector<8x1xf32>
    %143 = vector.broadcast %142 : vector<8x1xf32> to vector<8x8xf32>
    %144 = arith.mulf %139, %143 : vector<8x8xf32>
    %cst_42 = arith.constant dense<0.000000e+00> : vector<8x8xf32>
    %145 = tpu.matmul %144, %131, %cst_42 {dimension_numbers = #tpu.dot_dimension_numbers<[1], [0], [0], [1], [0, 0, 1, 1], [], []>} : vector<8x8xf32>, vector<8x8xf32>, vector<8x8xf32> -> vector<8x8xf32>
    %146 = tpu.concatenate %94, %111, %128, %145 in 1 : vector<8x8xf32>, vector<8x8xf32>, vector<8x8xf32>, vector<8x8xf32> -> vector<8x32xf32>
    %147 = tpu.concatenate %77, %146 in 0 : vector<8x32xf32>, vector<8x32xf32> -> vector<16x32xf32>
    %c0_43 = arith.constant 0 : index
    %c0_44 = arith.constant 0 : index
    %148 = vector.load %arg3[%c0_43, %c0_44] : memref<16x32xf32, #tpu.memory_space<vmem>>, vector<16x32xf32>
    tpu.vector_store %arg3[%c0_43, %c0_44], %147 {strides = array<i32>} : memref<16x32xf32, #tpu.memory_space<vmem>>, vector<16x32xf32>,
    return
  }
  func.func @transform_0(%arg0: i32) -> (i32, i32) {
    %c0_i32 = arith.constant 0 : i32
    %c0_i32_0 = arith.constant 0 : i32
    %c0_i32_1 = arith.constant 0 : i32
    return %c0_i32, %c0_i32_0 : i32, i32
  }
  func.func @transform_1(%arg0: i32) -> (i32, i32) {
    %c0_i32 = arith.constant 0 : i32
    %c0_i32_0 = arith.constant 0 : i32
    %c0_i32_1 = arith.constant 0 : i32
    return %c0_i32, %c0_i32_0 : i32, i32
  }
  func.func @transform_2(%arg0: i32) -> (i32, i32) {
    %c0_i32 = arith.constant 0 : i32
    %c0_i32_0 = arith.constant 0 : i32
    %c0_i32_1 = arith.constant 0 : i32
    return %c0_i32, %c0_i32_0 : i32, i32
  }
}

</mosaic_0001>

<bundles_post_ra>
// kernel: tpu_custom_call.1
= control target key start
LH: loop header
LB: loop body
LE: loop exit
PB: predicated region body
PF: predicated region fallthrough
CT: control target
= control target key end

     0   :  { %7 = vsyncpa [#allocation3], 0  ;;  %s2009_s0 = inlined_call_operand.hbm [shape: f32[16,32], index: 0, kind: input, shape index: {}]   ;;  %s2010_s1 = inlined_call_operand.hbm [shape: f32[32,96], index: 1, kind: input, shape index: {}]   ;;  %s2011_s2 = inlined_call_operand.hbm [shape: f32[16,32], index: 2, kind: output, shape index: {}]  }
   0x1   :  { %8 = vsyncpa [#allocation6], 0 }
   0x2   :  { %9 = vsyncpa [#allocation4], 0  ;;  %s1785_s9 = smov [#allocation2]  }
   0x3   :  { %s15_s10 = sshll.u32 %s1785_s9, 4  ;;  %s16_s10 = int_to_ptr.vmem [resolvable:$true] %s15_s10 }
   0x4   :  { %s1727_s11 = scalar_lea.vmem %s16_s10, 256  ;;  %p1732_p1 = scmp.lt.s32.totalorder %s16_s10, %s16_s10 }
   0x5   :  { %p1728_p0 = scmp.ne.s32.totalorder %s16_s10, %s1727_s11  ;;  %p1733_p2 = scmp.lt.s32.totalorder %s1727_s11, %s1727_s11 }
   0x7   :  { %p1734_p3 = por %p1733_p2, %p1732_p1 }
   0x9   :  { %p1735_p4 = pnand %p1734_p3, %p1728_p0 }
   0xb   :  { %1738 = shalt.err (!%p1735_p4)
}
   0xc   :  { %s1786_s12 = smov 128   ;;  %s1787_s13 = smov 8  }
   0xd   :  { %21 = dma.hbm_to_vmem [thread:$0]  %s2009_s0, 256, %s16_s10, [#allocation3], %s1786_s12, %s1786_s12, %s1787_s13  }
   0xe   :  { %s1788_s16 = smov [#allocation5]  }
   0xf   :  { %s27_s17 = sshll.u32 %s1788_s16, 4  ;;  %s28_s17 = int_to_ptr.vmem [resolvable:$true] %s27_s17 }
  0x10   :  { %s1747_s18 = scalar_lea.vmem %s28_s17, 512  ;;  %p1752_p6 = scmp.lt.s32.totalorder %s28_s17, %s28_s17 }
  0x11   :  { %p1748_p5 = scmp.ne.s32.totalorder %s28_s17, %s1747_s18  ;;  %p1753_p7 = scmp.lt.s32.totalorder %s1747_s18, %s1747_s18 }
  0x13   :  { %p1754_p8 = por %p1753_p7, %p1752_p6 }
  0x15   :  { %p1755_p9 = pnand %p1754_p8, %p1748_p5 }
  0x17   :  { %1758 = shalt.err (!%p1755_p9)
}
  0x18   :  { %33 = dma.hbm_to_vmem [thread:$0]  %s2010_s1, 512, %s28_s17, [#allocation6], %s1786_s12, %s1786_s12, %s1787_s13  }
  0x19   :  { %1779 = dma.done.wait [#allocation3], 256  }
  0x1a   :  { %1780 = vsyncadd [#allocation3], 4294967040 }
  0x1b   :  { %1781 = dma.done.wait [#allocation6], 512  }
  0x1c   :  { %1782 = vsyncadd [#allocation6], 4294966784  ;;  %vm46_vm0 = vcmask 261120   ;;  %v45_v0 = vld [vmem:[#allocation5 + $0x18] sm:$0xff]  ;;  %v44_v1 = vld [vmem:[#allocation5 + $0x10] sm:$0xff]  ;;  %v1789_v6 = vmov 0.0   ;;  %v128_v24 = vlaneseq }
  0x1d   :  { %1576 = vmatprep.subr.mxu0 %v45_v0  ;;  %v40_v2 = vld [vmem:[#allocation2] sm:$0xff]  ;;  %v43_v3 = vld [vmem:[#allocation5 + $0x8] sm:$0xff]  ;;  %v42_v4 = vld [vmem:[#allocation5] sm:$0xff]  ;;  %1587 = vmatprep.subr.mxu1 %v1789_v6  ;;  %vm1790_vm1 = vmmov 0   ;;  %s1791_s0 = smov 120   ;;  %s1792_s1 = smov 96  }
  0x1e   :  { %1577 = vmatpush3.msra.mxu0 %v45_v0  ;;  %1584 = vmatprep.mubr.msk.f32.mxu0 %vm46_vm0, %v40_v2  ;;  %v41_v5 = vld [vmem:[#allocation2 + $0x8] sm:$0xff]  ;;  %s1793_s21 = smov 80   ;;  %s1794_s22 = smov 88   ;;  %vm136_vm2 = vcmask 64512   ;;  %v129_v25 = vshrl.u32 %v128_v24, 7  ;;  %v131_v26 = vand.u32 127, %v128_v24 }
  0x1f   :  { %1578 = vmatprep.subr.mxu0 %v44_v1  ;;  %1589 = vmatprep.mubr.msk.f32.mxu1 %vm1790_vm1, %v1789_v6  ;;  %s1795_s23 = smov 72   ;;  %s1796_s24 = smov 112   ;;  %vm810_vm4 = vcmask 130048   ;;  %vm812_vm5 = vcmask 195584  }
  0x20   :  { %1579 = vmatpush3.msra.mxu0 %v44_v1  ;;  %s1797_s25 = smov 104   ;;  %s1798_s26 = smov 56   ;;  %vm1902_vm3 = vcmp.le.s32.totalorder %v131_v26, %v129_v25 }
  0x21   :  { %1580 = vmatprep.subr.mxu0 %v43_v3  ;;  %s1799_s27 = smov 64   ;;  %s1800_s28 = smov 40  }
  0x22   :  { %1581 = vmatpush3.msra.mxu0 %v43_v3  ;;  %s1801_s29 = smov 48   ;;  %s1802_s30 = smov 16  }
  0x23   :  { %1582 = vmatprep.subr.mxu0 %v42_v4  ;;  %s1803_s3 = smov 24   ;;  %s1804_s4 = smov [#allocation7]  }
  0x24   :  { %1583 = vmatpush3.msra.mxu0 %v42_v4  ;;  %s1499_s5 = sshll.u32 %s1804_s4, 4  ;;  %s1500_s5 = int_to_ptr.vmem [resolvable:$true] %s1499_s5 }
  0x25   :  { %1585 = vmatmul.mubr.msk.f32.vlgmr.msra.gmra.mxu0 %vm46_vm0, %v41_v5  ;;  %1597 = vmatprep.subr.mxu0 %v1789_v6  ;;  %s1759_s6 = scalar_lea.vmem %s1500_s5, 256  ;;  %p1764_p11 = scmp.lt.s32.totalorder %s1500_s5, %s1500_s5 }
  0x26   :  { %1599 = vmatprep.mubr.msk.f32.mxu0 %vm1790_vm1, %v1789_v6  ;;  %p1760_p10 = scmp.ne.s32.totalorder %s1500_s5, %s1759_s6  ;;  %p1765_p12 = scmp.lt.s32.totalorder %s1759_s6, %s1759_s6 }
  0x28   :  { %p1766_p13 = por %p1765_p12, %p1764_p11 }
  0x2a   :  { %p1767_p0 = pnand %p1766_p13, %p1760_p10 }
  0xe5   :  { %v1840_v7 = vpop.f32.mrf.mxu0 }
  0xe7   :  { %v1842_v8 = vpop.f32.mrf.mxu0 }
  0xe8   :  { %299 = vrot.lane.b32.xlu1 %v1842_v8, %s1791_s0  ;;  %134 = vrot.lane.b32.xlu0 %v1842_v8, %s1792_s1 }
  0xec   :  { %467 = vrot.lane.b32.xlu1 %v1842_v8, %s1793_s21  ;;  %301 = vrot.lane.b32.xlu0 %v1842_v8, %s1794_s22 }
  0xf0   :  { %633 = vrot.lane.b32.xlu1 %v1842_v8, %s1795_s23  ;;  %465 = vrot.lane.b32.xlu0 %v1842_v8, %s1796_s24 }
  0xf4   :  { %815 = vrot.lane.b32.xlu1 %v1840_v7, %s1792_s1  ;;  %631 = vrot.lane.b32.xlu0 %v1842_v8, %s1797_s25 }
  0xf8   :  { %979 = vrot.lane.b32.xlu1 %v1840_v7, %s1791_s0  ;;  %981 = vrot.lane.b32.xlu0 %v1840_v7, %s1794_s22 }
  0xfc   :  { %1145 = vrot.lane.b32.xlu1 %v1840_v7, %s1796_s24  ;;  %1147 = vrot.lane.b32.xlu0 %v1840_v7, %s1793_s21 }
 0x100   :  { %1311 = vrot.lane.b32.xlu1 %v1840_v7, %s1797_s25  ;;  %1313 = vrot.lane.b32.xlu0 %v1840_v7, %s1795_s23 }
 0x104   :  { %389 = vrot.lane.b32.xlu1 %v1842_v8, %s1798_s26  ;;  %223 = vrot.lane.b32.xlu0 %v1842_v8, %s1799_s27 }
 0x15a   :  { %v300_v9 = vpop.permute.xlu1 %299  ;;  %v135_v10 = vpop.permute.xlu0 %134 }
 0x15b   :  { %1588 = vmatpush3.xpose.msk.msra.mxu1 %vm136_vm2, %v135_v10 }
 0x15c   :  { %1592 = vmatprep.subr.mxu1 %v1789_v6 }
 0x15e   :  { %v468_v11 = vpop.permute.xlu1 %467  ;;  %1590 = vmatmul.mubr.msk.f32.vlgmr.msra.gmra.mxu1 %vm136_vm2, %v1842_v8  ;;  %v302_v12 = vpop.permute.xlu0 %301 }
 0x15f   :  { %1598 = vmatpush3.xpose.msk.msra.mxu0 %vm136_vm2, %v302_v12  ;;  %1594 = vmatprep.mubr.msk.f32.mxu1 %vm1790_vm1, %v1789_v6 }
 0x160   :  { %1607 = vmatprep.subr.mxu0 %v1789_v6 }
 0x162   :  { %v634_v13 = vpop.permute.xlu1 %633  ;;  %1600 = vmatmul.mubr.msk.f32.vlgmr.msra.gmra.mxu0 %vm136_vm2, %v300_v9  ;;  %v466_v14 = vpop.permute.xlu0 %465 }
 0x163   :  { %1608 = vmatpush3.xpose.msk.msra.mxu0 %vm136_vm2, %v468_v11  ;;  %1609 = vmatprep.mubr.msk.f32.mxu0 %vm1790_vm1, %v1789_v6 }
 0x164   :  { %1617 = vmatprep.subr.mxu0 %v1789_v6 }
 0x166   :  { %1610 = vmatmul.mubr.msk.f32.vlgmr.msra.gmra.mxu0 %vm136_vm2, %v466_v14  ;;  %v632_v15 = vpop.permute.xlu0 %631  ;;  %v816_v16 = vpop.permute.xlu1 %815 }
 0x167   :  { %1618 = vmatpush3.xpose.msk.msra.mxu0 %vm136_vm2, %v634_v13  ;;  %1619 = vmatprep.mubr.msk.f32.mxu0 %vm1790_vm1, %v1789_v6 }
 0x168   :  { %1627 = vmatprep.subr.mxu0 %v1789_v6 }
 0x16a   :  { %1620 = vmatmul.mubr.msk.f32.vlgmr.msra.gmra.mxu0 %vm136_vm2, %v632_v15  ;;  %v982_v17 = vpop.permute.xlu0 %981  ;;  %v980_v18 = vpop.permute.xlu1 %979 }
 0x16b   :  { %1628 = vmatpush3.xpose.msk.msra.mxu0 %vm136_vm2, %v816_v16  ;;  %1629 = vmatprep.mubr.msk.f32.mxu0 %vm1790_vm1, %v1789_v6 }
 0x16c   :  { %1637 = vmatprep.subr.mxu0 %v1789_v6 }
 0x16e   :  { %1630 = vmatmul.mubr.msk.f32.vlgmr.msra.gmra.mxu0 %vm136_vm2, %v1840_v7  ;;  %v1148_v19 = vpop.permute.xlu0 %1147  ;;  %v1146_v21 = vpop.permute.xlu1 %1145 }
 0x16f   :  { %1638 = vmatpush3.xpose.msk.msra.mxu0 %vm136_vm2, %v982_v17  ;;  %1639 = vmatprep.mubr.msk.f32.mxu0 %vm1790_vm1, %v1789_v6 }
 0x170   :  { %1647 = vmatprep.subr.mxu0 %v1789_v6 }
 0x172   :  { %1640 = vmatmul.mubr.msk.f32.vlgmr.msra.gmra.mxu0 %vm136_vm2, %v980_v18  ;;  %v1314_v20 = vpop.permute.xlu0 %1313  ;;  %v1312_v23 = vpop.permute.xlu1 %1311 }
 0x173   :  { %1648 = vmatpush3.xpose.msk.msra.mxu0 %vm136_vm2, %v1148_v19  ;;  %1649 = vmatprep.mubr.msk.f32.mxu0 %vm1790_vm1, %v1789_v6 }
 0x174   :  { %1657 = vmatprep.subr.mxu0 %v1789_v6 }
 0x176   :  { %1650 = vmatmul.mubr.msk.f32.vlgmr.msra.gmra.mxu0 %vm136_vm2, %v1146_v21  ;;  %v224_v22 = vpop.permute.xlu0 %223  ;;  %v1934_v60 = vpop.permute.xlu1 %389 }
 0x177   :  { %1593 = vmatpush3.msra.mxu1 %v224_v22  ;;  %1658 = vmatpush3.xpose.msk.msra.mxu0 %vm136_vm2, %v1314_v20 }
 0x178   :  { %1659 = vmatprep.mubr.msk.f32.mxu0 %vm1790_vm1, %v1789_v6  ;;  %1602 = vmatprep.subr.mxu1 %v1789_v6 }
 0x17a   :  { %1660 = vmatmul.mubr.msk.f32.vlgmr.msra.gmra.mxu0 %vm136_vm2, %v1312_v23 }
 0x21e   :  { %v207_v28 = vpop.f32.mrf.mxu1 }
 0x21f   :  { %v211_v29 = vsel %vm1902_vm3, %v207_v28, -1e+30 }
 0x220   :  { %v1591_v30 = vpop.f32.mrf.mxu1  ;;  %v212_v31 = vsel %vm136_vm2, %v211_v29, -inf }
 0x221   :  { %213 = vmax.xlane.f32.xlu0 %v212_v31 }
 0x222   :  { %v373_v32 = vpop.f32.mrf.mxu0 }
 0x223   :  { %v377_v33 = vsel %vm1902_vm3, %v373_v32, -1e+30 }
 0x224   :  { %v1601_v34 = vpop.f32.mrf.mxu0  ;;  %v378_v35 = vsel %vm136_vm2, %v377_v33, -inf }
 0x225   :  { %379 = vmax.xlane.f32.xlu1 %v378_v35 }
 0x226   :  { %v539_v36 = vpop.f32.mrf.mxu0 }
 0x227   :  { %v543_v37 = vsel %vm1902_vm3, %v539_v36, -1e+30 }
 0x228   :  { %v1611_v38 = vpop.f32.mrf.mxu0  ;;  %v544_v39 = vsel %vm136_vm2, %v543_v37, -inf }
 0x229   :  { %545 = vmax.xlane.f32.xlu0 %v544_v39 }
 0x22a   :  { %v705_v40 = vpop.f32.mrf.mxu0 }
 0x22b   :  { %v709_v41 = vsel %vm1902_vm3, %v705_v40, -1e+30 }
 0x22c   :  { %v1621_v42 = vpop.f32.mrf.mxu0  ;;  %v710_v43 = vsel %vm136_vm2, %v709_v41, -inf }
 0x22d   :  { %711 = vmax.xlane.f32.xlu0 %v710_v43 }
 0x22e   :  { %v887_v44 = vpop.f32.mrf.mxu0 }
 0x22f   :  { %v891_v45 = vsel %vm1902_vm3, %v887_v44, -1e+30 }
 0x230   :  { %v1631_v46 = vpop.f32.mrf.mxu0  ;;  %v892_v47 = vsel %vm136_vm2, %v891_v45, -inf }
 0x231   :  { %893 = vmax.xlane.f32.xlu1 %v892_v47 }
 0x232   :  { %v1053_v48 = vpop.f32.mrf.mxu0 }
 0x233   :  { %v1057_v49 = vsel %vm1902_vm3, %v1053_v48, -1e+30 }
 0x234   :  { %v1641_v50 = vpop.f32.mrf.mxu0  ;;  %v1058_v51 = vsel %vm136_vm2, %v1057_v49, -inf }
 0x235   :  { %1059 = vmax.xlane.f32.xlu0 %v1058_v51 }
 0x236   :  { %v1219_v52 = vpop.f32.mrf.mxu0 }
 0x237   :  { %v1223_v53 = vsel %vm1902_vm3, %v1219_v52, -1e+30 }
 0x238   :  { %v1651_v54 = vpop.f32.mrf.mxu0  ;;  %v1224_v55 = vsel %vm136_vm2, %v1223_v53, -inf }
 0x239   :  { %1225 = vmax.xlane.f32.xlu1 %v1224_v55 }
 0x23a   :  { %v1385_v56 = vpop.f32.mrf.mxu0 }
 0x23b   :  { %v1389_v57 = vsel %vm1902_vm3, %v1385_v56, -1e+30 }
 0x23c   :  { %v1661_v58 = vpop.f32.mrf.mxu0  ;;  %v1390_v59 = vsel %vm136_vm2, %v1389_v57, -inf }
 0x23d   :  { %1391 = vmax.xlane.f32.xlu0 %v1390_v59 }
 0x24a   :  { %721 = vrot.lane.b32.xlu1 %v1842_v8, %s1800_s28 }
 0x253   :  { %555 = vrot.lane.b32.xlu0 %v1842_v8, %s1801_s29 }
 0x2aa   :  { %v214_v61 = vpop.xlane.xlu0 %213 }
 0x2ab   :  { %v215_v62 = vsub.f32 %v211_v29, %v214_v61 }
 0x2ad   :  { %v216_v63 = vmul.f32 1.442695, %v215_v62 }
 0x2ae   :  { %v380_v0 = vpop.xlane.xlu1 %379 }
 0x2af   :  { %1687 = vpow2.f32 %v216_v63  ;;  %v381_v1 = vsub.f32 %v377_v33, %v380_v0 }
 0x2b1   :  { %v382_v2 = vmul.f32 1.442695, %v381_v1 }
 0x2b2   :  { %v546_v3 = vpop.xlane.xlu0 %545 }
 0x2b3   :  { %1689 = vpow2.f32 %v382_v2  ;;  %v547_v4 = vsub.f32 %v543_v37, %v546_v3 }
 0x2b5   :  { %v548_v5 = vmul.f32 1.442695, %v547_v4 }
 0x2b6   :  { %v712_v9 = vpop.xlane.xlu0 %711 }
 0x2b7   :  { %1691 = vpow2.f32 %v548_v5  ;;  %v713_v10 = vsub.f32 %v709_v41, %v712_v9 }
 0x2b9   :  { %v714_v11 = vmul.f32 1.442695, %v713_v10 }
 0x2ba   :  { %v894_v19 = vpop.xlane.xlu1 %893 }
 0x2bb   :  { %1693 = vpow2.f32 %v714_v11  ;;  %v895_v20 = vsub.f32 %v891_v45, %v894_v19 }
 0x2bc   :  { %v1688_v12 = vpop.eup %1687 }
 0x2bd   :  { %v218_v8 = vsel %vm136_vm2, %v1688_v12, 0.0  ;;  %v896_v24 = vmul.f32 1.442695, %v895_v20 }
 0x2be   :  { %219 = vadd.xlane.f32.xlu1 %v218_v8  ;;  %v1060_v21 = vpop.xlane.xlu0 %1059 }
 0x2bf   :  { %v1061_v23 = vsub.f32 %v1057_v49, %v1060_v21  ;;  %1695 = vpow2.f32 %v896_v24 }
 0x2c0   :  { %v1690_v13 = vpop.eup %1689 }
 0x2c1   :  { %v384_v14 = vsel %vm136_vm2, %v1690_v13, 0.0  ;;  %v1062_v27 = vmul.f32 1.442695, %v1061_v23 }
 0x2c2   :  { %385 = vadd.xlane.f32.xlu0 %v384_v14  ;;  %v1226_v22 = vpop.xlane.xlu1 %1225 }
 0x2c3   :  { %v1227_v25 = vsub.f32 %v1223_v53, %v1226_v22  ;;  %1697 = vpow2.f32 %v1062_v27 }
 0x2c4   :  { %v1692_v15 = vpop.eup %1691 }
 0x2c5   :  { %v550_v16 = vsel %vm136_vm2, %v1692_v15, 0.0  ;;  %v1228_v28 = vmul.f32 1.442695, %v1227_v25 }
 0x2c6   :  { %551 = vadd.xlane.f32.xlu1 %v550_v16  ;;  %v1392_v26 = vpop.xlane.xlu0 %1391  ;;  %v722_v39 = vpop.permute.xlu1 %721 }
 0x2c7   :  { %v1393_v29 = vsub.f32 %v1389_v57, %v1392_v26  ;;  %1699 = vpow2.f32 %v1228_v28 }
 0x2c8   :  { %v1939_v17 = vpop.eup %1693 }
 0x2c9   :  { %v716_v18 = vsel %vm136_vm2, %v1939_v17, 0.0  ;;  %v1394_v30 = vmul.f32 1.442695, %v1393_v29 }
 0x2ca   :  { %717 = vadd.xlane.f32.xlu0 %v716_v18  ;;  %v556_v40 = vpop.permute.xlu0 %555 }
 0x2cb   :  { %1701 = vpow2.f32 %v1394_v30 }
 0x2cc   :  { %v1696_v31 = vpop.eup %1695 }
 0x2cd   :  { %v898_v33 = vsel %vm136_vm2, %v1696_v31, 0.0 }
 0x2d0   :  { %v1947_v32 = vpop.eup %1697 }
 0x2d1   :  { %v1064_v36 = vsel %vm136_vm2, %v1947_v32, 0.0 }
 0x2d4   :  { %v1950_v34 = vpop.eup %1699 }
 0x2d5   :  { %v1230_v35 = vsel %vm136_vm2, %v1950_v34, 0.0 }
 0x2d7   :  { %1069 = vrot.lane.b32.xlu1 %v1840_v7, %s1798_s26 }
 0x2d8   :  { %v1956_v37 = vpop.eup %1701 }
 0x2d9   :  { %v1396_v38 = vsel %vm136_vm2, %v1956_v37, 0.0 }
 0x2e0   :  { %903 = vrot.lane.b32.xlu0 %v1840_v7, %s1799_s27 }
 0x2fb   :  { %899 = vadd.xlane.f32.xlu1 %v898_v33 }
 0x2ff   :  { %1231 = vadd.xlane.f32.xlu1 %v1230_v35  ;;  %1065 = vadd.xlane.f32.xlu0 %v1064_v36 }
 0x303   :  { %1397 = vadd.xlane.f32.xlu1 %v1396_v38 }
 0x314   :  { %1401 = vrot.lane.b32.xlu1 %v1840_v7, %s1800_s28 }
 0x315   :  { %1235 = vrot.lane.b32.xlu0 %v1840_v7, %s1801_s29 }
 0x347   :  { %v220_v41 = vpop.xlane.xlu1 %219 }
 0x348   :  { %1703 = vrcp.f32 %v220_v41 }
 0x34b   :  { %v386_v42 = vpop.xlane.xlu0 %385 }
 0x34c   :  { %1705 = vrcp.f32 %v386_v42 }
 0x34f   :  { %v552_v43 = vpop.xlane.xlu1 %551 }
 0x350   :  { %1707 = vrcp.f32 %v552_v43 }
 0x353   :  { %v718_v44 = vpop.xlane.xlu0 %717  ;;  %v1070_v53 = vpop.permute.xlu1 %1069 }
 0x354   :  { %1709 = vrcp.f32 %v718_v44 }
 0x355   :  { %v1704_v45 = vpop.eup %1703 }
 0x356   :  { %v222_v46 = vmul.f32 %v1704_v45, %v1688_v12 }
 0x357   :  { %v904_v52 = vpop.permute.xlu0 %903 }
 0x358   :  { %1595 = vmatmul.mubr.msk.f32.vlgmr.msra.gmra.mxu1 %vm136_vm2, %v222_v46 }
 0x359   :  { %v1706_v47 = vpop.eup %1705  ;;  %1603 = vmatpush3.msra.mxu1 %v1934_v60  ;;  %1604 = vmatprep.mubr.msk.f32.mxu1 %vm1790_vm1, %v1789_v6 }
 0x35a   :  { %1612 = vmatprep.subr.mxu1 %v1789_v6  ;;  %v388_v7 = vmul.f32 %v1706_v47, %v1690_v13 }
 0x35c   :  { %1605 = vmatmul.mubr.msk.f32.vlgmr.msra.gmra.mxu1 %vm136_vm2, %v388_v7 }
 0x35d   :  { %v1708_v48 = vpop.eup %1707  ;;  %1613 = vmatpush3.msra.mxu1 %v556_v40  ;;  %1614 = vmatprep.mubr.msk.f32.mxu1 %vm1790_vm1, %v1789_v6 }
 0x35e   :  { %1622 = vmatprep.subr.mxu1 %v1789_v6  ;;  %v554_v49 = vmul.f32 %v1708_v48, %v1692_v15 }
 0x360   :  { %1615 = vmatmul.mubr.msk.f32.vlgmr.msra.gmra.mxu1 %vm136_vm2, %v554_v49 }
 0x361   :  { %v1710_v50 = vpop.eup %1709  ;;  %1623 = vmatpush3.msra.mxu1 %v722_v39  ;;  %1624 = vmatprep.mubr.msk.f32.mxu1 %vm1790_vm1, %v1789_v6 }
 0x362   :  { %1632 = vmatprep.subr.mxu1 %v1789_v6  ;;  %v720_v51 = vmul.f32 %v1710_v50, %v1939_v17 }
 0x364   :  { %1625 = vmatmul.mubr.msk.f32.vlgmr.msra.gmra.mxu1 %vm136_vm2, %v720_v51 }
 0x365   :  { %1633 = vmatpush3.msra.mxu1 %v904_v52  ;;  %1634 = vmatprep.mubr.msk.f32.mxu1 %vm1790_vm1, %v1789_v6 }
 0x366   :  { %1642 = vmatprep.subr.mxu1 %v1789_v6 }
 0x384   :  { %v900_v54 = vpop.xlane.xlu1 %899 }
 0x385   :  { %1711 = vrcp.f32 %v900_v54 }
 0x388   :  { %v1232_v55 = vpop.xlane.xlu1 %1231  ;;  %v1066_v56 = vpop.xlane.xlu0 %1065 }
 0x389   :  { %1713 = vrcp.f32 %v1066_v56 }
 0x38a   :  { %1715 = vrcp.f32 %v1232_v55 }
 0x38c   :  { %v1398_v57 = vpop.xlane.xlu1 %1397  ;;  %v1236_v63 = vpop.permute.xlu0 %1235 }
 0x38d   :  { %1717 = vrcp.f32 %v1398_v57 }
 0x390   :  { %v1402_v2 = vpop.permute.xlu1 %1401 }
 0x392   :  { %v1712_v58 = vpop.eup %1711 }
 0x393   :  { %v902_v59 = vmul.f32 %v1712_v58, %v1696_v31 }
 0x395   :  { %1635 = vmatmul.mubr.msk.f32.vlgmr.msra.gmra.mxu1 %vm136_vm2, %v902_v59 }
 0x396   :  { %1643 = vmatpush3.msra.mxu1 %v1070_v53  ;;  %1644 = vmatprep.mubr.msk.f32.mxu1 %vm1790_vm1, %v1789_v6  ;;  %v1714_v60 = vpop.eup %1713 }
 0x397   :  { %1652 = vmatprep.subr.mxu1 %v1789_v6  ;;  %v1068_v61 = vmul.f32 %v1714_v60, %v1947_v32  ;;  %v1716_v62 = vpop.eup %1715 }
 0x398   :  { %v1234_v0 = vmul.f32 %v1716_v62, %v1950_v34 }
 0x399   :  { %1645 = vmatmul.mubr.msk.f32.vlgmr.msra.gmra.mxu1 %vm136_vm2, %v1068_v61 }
 0x39a   :  { %1653 = vmatpush3.msra.mxu1 %v1236_v63  ;;  %1654 = vmatprep.mubr.msk.f32.mxu1 %vm1790_vm1, %v1789_v6  ;;  %v1718_v1 = vpop.eup %1717 }
 0x39b   :  { %1662 = vmatprep.subr.mxu1 %v1789_v6  ;;  %v1400_v3 = vmul.f32 %v1718_v1, %v1956_v37 }
 0x39d   :  { %1655 = vmatmul.mubr.msk.f32.vlgmr.msra.gmra.mxu1 %vm136_vm2, %v1234_v0 }
 0x39e   :  { %1663 = vmatpush3.msra.mxu1 %v1402_v2  ;;  %1664 = vmatprep.mubr.msk.f32.mxu1 %vm1790_vm1, %v1789_v6 }
 0x3a1   :  { %1665 = vmatmul.mubr.msk.f32.vlgmr.msra.gmra.mxu1 %vm136_vm2, %v1400_v3 }
 0x418   :  { %v295_v4 = vpop.f32.mrf.mxu1 }
 0x41a   :  { %v1596_v5 = vpop.f32.mrf.mxu1 }
 0x41c   :  { %v461_v9 = vpop.f32.mrf.mxu1 }
 0x41d   :  { %798 = vrot.lane.b32.xlu0 %v461_v9, %s1787_s13 }
 0x41e   :  { %v1606_v10 = vpop.f32.mrf.mxu1 }
 0x420   :  { %v627_v11 = vpop.f32.mrf.mxu1 }
 0x421   :  { %802 = vrot.lane.b32.xlu1 %v627_v11, %s1802_s30 }
 0x422   :  { %v1616_v12 = vpop.f32.mrf.mxu1 }
 0x424   :  { %v793_v8 = vpop.f32.mrf.mxu1 }
 0x425   :  { %806 = vrot.lane.b32.xlu0 %v793_v8, %s1803_s3 }
 0x426   :  { %v1626_v13 = vpop.f32.mrf.mxu1 }
 0x455   :  { %v975_v14 = vpop.f32.mrf.mxu1 }
 0x457   :  { %v1636_v6 = vpop.f32.mrf.mxu1 }
 0x459   :  { %v1141_v15 = vpop.f32.mrf.mxu1 }
 0x45a   :  { %1478 = vrot.lane.b32.xlu1 %v1141_v15, %s1787_s13 }
 0x45b   :  { %v1646_v16 = vpop.f32.mrf.mxu1 }
 0x45d   :  { %v1307_v17 = vpop.f32.mrf.mxu1 }
 0x45e   :  { %1482 = vrot.lane.b32.xlu0 %v1307_v17, %s1802_s30 }
 0x45f   :  { %v1656_v18 = vpop.f32.mrf.mxu1 }
 0x461   :  { %v1473_v19 = vpop.f32.mrf.mxu1 }
 0x462   :  { %1486 = vrot.lane.b32.xlu1 %v1473_v19, %s1803_s3 }
 0x463   :  { %v1666_v20 = vpop.f32.mrf.mxu1 }
 0x48f   :  { %v799_v21 = vpop.permute.xlu0 %798 }
 0x490   :  { %v809_v23 = vsel %vm136_vm2, %v295_v4, %v799_v21 }
 0x493   :  { %v803_v22 = vpop.permute.xlu1 %802 }
 0x494   :  { %v811_v24 = vsel %vm810_vm4, %v809_v23, %v803_v22 }
 0x497   :  { %v807_v25 = vpop.permute.xlu0 %806 }
 0x498   :  { %v813_v26 = vsel %vm812_vm5, %v811_v24, %v807_v25 }
 0x499   :  { %1492 = vst.msk [vmem:[#allocation7] sm:$0xff] %vm46_vm0, %v813_v26 }
 0x4cc   :  { %v1479_v27 = vpop.permute.xlu1 %1478 }
 0x4cd   :  { %v1489_v29 = vsel %vm136_vm2, %v975_v14, %v1479_v27 }
 0x4d0   :  { %v1483_v28 = vpop.permute.xlu0 %1482 }
 0x4d1   :  { %v1490_v30 = vsel %vm810_vm4, %v1489_v29, %v1483_v28 }
 0x4d4   :  { %v1487_v31 = vpop.permute.xlu1 %1486 }
 0x4d5   :  { %v1491_v32 = vsel %vm812_vm5, %v1490_v30, %v1487_v31 }
 0x4d6   :  { %1493 = vst.msk [vmem:[#allocation7 + $0x8] sm:$0xff] %vm46_vm0, %v1491_v32 }
 0x4d7   :  { %1770 = shalt.err (!%p1767_p0)
}
 0x4d8   :  { %1505 = dma.vmem_to_hbm [thread:$0]  %s1500_s5, 256, %s2011_s2, [#allocation4], %s1786_s12, %s1786_s12, %s1787_s13  }
 0x4d9   :  { %1783 = dma.done.wait [#allocation4], 256  }
 0x4da   :  { %1784 = vsyncadd [#allocation4], 4294967040 }
 0x4db   :  { %1509 = vsyncpa [#allocation3], 1 }
 0x4dc   :  { %1510 = vsyncpa [#allocation6], 1 }
 0x4dd   :  { %1511 = vsyncpa [#allocation4], 1 }

</bundles_post_ra>
